<compile_context>
chip_gen: v7x
topology: tpu7x:2x2x1
jax: 0.10.0
libtpu: 0.0.40
codegen_flags: <defaults>
</compile_context>

<pallas_src>
import functools

import jax
import jax.numpy as jnp
import numpy as np
from jax import lax
from jax.experimental import pallas as pl
from jax.experimental.pallas import tpu as pltpu

EPS = 1e-5      # PyTorch BatchNorm2d default eps
LANE = 128


def _round_up(x, m):
    return (x + m - 1) // m * m


def _vmem_limit_bytes():
    """Generation-aware scoped-VMEM limit (~3/4 of physical capacity)."""
    cap = None
    try:
        cap = getattr(pltpu.get_tpu_info(), "vmem_capacity_bytes", None)
    except Exception:
        cap = None
    if not cap:
        return 48 * 1024 * 1024                    # safe on v5e / v6e / v7x
    return max(32 * 1024 * 1024, int(cap) * 3 // 4)  # ~96 MiB (128) / ~48 MiB (64)


def _lane_tile(P, max_tile=32768):
    """Largest multiple-of-128 tile <= max_tile that divides P (P % 128 == 0)."""
    if P <= max_tile:
        return P
    t = max_tile - (max_tile % LANE)
    while t >= LANE:
        if P % t == 0:
            return t
        t -= LANE
    return P


def _make_conv_kernel(Wp, P, cin_pad, cout_pad, apply_input_bn_relu,
                      use_bf16, use_concat_im2col):
    """3x3 'same' conv over one image held as (channels, padded flat pixels)."""
    compute_dtype = jnp.bfloat16 if use_bf16 else jnp.float32
    nblk = P // LANE
    taps = [(kh, kw) for kh in range(3) for kw in range(3)]

    def kernel(*refs):
        if apply_input_bn_relu:
            x_ref, w_ref, scale_ref, shift_ref, mask_ref, y_ref, stats_ref = refs
        else:
            x_ref, w_ref, mask_ref, y_ref, stats_ref = refs

        m = mask_ref[...]                                   # (1, P) f32 interior mask

        if apply_input_bn_relu:
            # previous conv's BatchNorm folded to one FMA (kept in f32) + ReLU;
            # re-zero the padding ring / lane tail so it keeps acting as the
            # conv zero-padding.  Cast to the MXU dtype BEFORE the 9 rolls.
            xf = x_ref[0].astype(jnp.float32)
            xf = jnp.maximum(xf * scale_ref[...] + shift_ref[...], 0.0) * m
            x = xf.astype(compute_dtype)
        else:
            x = x_ref[0].astype(compute_dtype)              # no-op if pre-cast

        w = w_ref[...]                                      # pre-cast in wrapper

        if use_concat_im2col:
            # im2col: 9 lane-rolled copies stacked on the channel (sublane)
            # axis -> one MXU matmul, f32 accumulation.
            parts = []
            for kh, kw in taps:
                d = (kh - 1) * Wp + (kw - 1)                # flat pixel offset
                parts.append(x if d == 0 else pltpu.roll(x, (-d) % P, axis=1))
            patches = jnp.concatenate(parts, axis=0)        # (9*cin_pad, P)
            y = jnp.dot(w, patches, preferred_element_type=jnp.float32)
        else:
            # per-tap accumulation: no 9x im2col VMEM intermediate (large-Cin
            # stages / v7x band plans).
            y = None
            for t, (kh, kw) in enumerate(taps):
                d = (kh - 1) * Wp + (kw - 1)
                xt = x if d == 0 else pltpu.roll(x, (-d) % P, axis=1)
                wt = w[:, t * cin_pad:(t + 1) * cin_pad]    # (cout_pad, cin_pad)
                yt = jnp.dot(wt, xt, preferred_element_type=jnp.float32)
                y = yt if y is None else y + yt

        y = y * m                                           # zero ring + lane tail
        y_ref[0] = y.astype(y_ref.dtype)

        # partial BN statistics (f32): fold the pixel axis down to one 128-lane
        # group per channel with a bounded fori_loop seeded from block 0; the
        # wrapper finishes the tiny per-channel reduction.
        def body(k, carry):
            ps, pq = carry
            off = pl.multiple_of(k * LANE, LANE)
            blk = y_ref[0, :, pl.ds(off, LANE)].astype(jnp.float32)
            return ps + blk, pq + blk * blk

        blk0 = y_ref[0, :, :LANE].astype(jnp.float32)
        ps, pq = lax.fori_loop(1, nblk, body, (blk0, blk0 * blk0),
                               unroll=min(4, max(1, nblk - 1)))
        stats_ref[0, :cout_pad, :] = ps
        stats_ref[0, cout_pad:, :] = pq

    return kernel


def _make_bn_relu_kernel(c_out):
    """Folded BN (single FMA) + ReLU on a lane tile; drops channel padding."""
    def kernel(y_ref, scale_ref, shift_ref, o_ref):
        y = y_ref[0].astype(jnp.float32)                    # (c_pad, PT)
        act = jnp.maximum(y * scale_ref[...] + shift_ref[...], 0.0)
        o_ref[0] = act[:c_out].astype(o_ref.dtype)
    return kernel


def _conv_pass(x_p, w_mat, mask, *, Wp, P, in_scale=None, in_shift=None,
               use_bf16=False, per_tap_threshold=256):
    N, cin_pad, _ = x_p.shape
    cout_pad = w_mat.shape[0]
    apply_in = in_scale is not None
    use_concat = 9 * cin_pad <= per_tap_threshold
    out_dtype = jnp.bfloat16 if use_bf16 else jnp.float32

    kernel = _make_conv_kernel(Wp, P, cin_pad, cout_pad, apply_in,
                               use_bf16, use_concat)

    def full(shape):
        return pl.BlockSpec(shape, lambda n: (0,) * len(shape))

    in_specs = [pl.BlockSpec((1, cin_pad, P), lambda n: (n, 0, 0)),
                full((cout_pad, w_mat.shape[1]))]
    operands = [x_p, w_mat]
    if apply_in:
        in_specs += [full((cin_pad, 1)), full((cin_pad, 1))]
        operands += [in_scale, in_shift]
    in_specs.append(full((1, P)))
    operands.append(mask)

    # TODO(synk): H-band tiling (grid=(N, n_bands), 1-row halo, band axis
    # parallel) for large spatial extents so a band + per-tap accumulation fits
    # v7x's 64 MiB VMEM and both v7x TensorCores stay busy even at batch 1; the
    # two-pass BN scheme already supports per-band partial statistics.
    y, stats = pl.pallas_call(
        kernel,
        out_shape=(jax.ShapeDtypeStruct((N, cout_pad, P), out_dtype),
                   jax.ShapeDtypeStruct((N, 2 * cout_pad, LANE), jnp.float32)),
        grid_spec=pltpu.PrefetchScalarGridSpec(
            num_scalar_prefetch=0,
            grid=(N,),
            in_specs=in_specs,
            out_specs=[pl.BlockSpec((1, cout_pad, P), lambda n: (n, 0, 0)),
                       pl.BlockSpec((1, 2 * cout_pad, LANE), lambda n: (n, 0, 0))],
        ),
        compiler_params=pltpu.CompilerParams(
            dimension_semantics=("parallel",),          # per-image
            vmem_limit_bytes=_vmem_limit_bytes()),
    )(*operands)
    return y, stats


def _bn_finalize(stats, gamma_pad, beta_pad, count):
    # finish the two-pass BN reduction (tiny per-channel math) and fold into a
    # single scale/shift FMA: y_bn = y*scale + shift
    cp = stats.shape[1] // 2
    s = jnp.sum(stats[:, :cp, :], axis=(0, 2))
    q = jnp.sum(stats[:, cp:, :], axis=(0, 2))
    mean = s / count
    var = jnp.maximum(q / count - mean * mean, 0.0)
    scale = gamma_pad * lax.rsqrt(var + EPS)
    shift = beta_pad - mean * scale
    return scale.reshape(-1, 1), shift.reshape(-1, 1)


def double_conv_padded(xp, mask, w1m, w2m, g1p, be1p, g2p, be2p, *, Wp, P, count,
                       in_scale=None, in_shift=None, use_bf16_mxu=False,
                       per_tap_threshold=256):
    """Core DoubleConv on the padded (N, C_pad, P) inter-layer layout.

    Accepts an optional folded BN scale/shift for its *input* (applied + ReLU'd
    in conv1's prologue) and returns the raw conv2 output together with the
    folded BN2 scale/shift, so a chained consumer (next DoubleConv / pool / up
    stage) folds BN2+ReLU into its own prologue: no standalone elementwise pass
    and no pad/un-pad copies are materialized between stages.
    """
    y1, st1 = _conv_pass(xp, w1m, mask, Wp=Wp, P=P, in_scale=in_scale,
                         in_shift=in_shift, use_bf16=use_bf16_mxu,
                         per_tap_threshold=per_tap_threshold)
    sc1, sh1 = _bn_finalize(st1, g1p, be1p, count)

    y2, st2 = _conv_pass(y1, w2m, mask, Wp=Wp, P=P, in_scale=sc1, in_shift=sh1,
                         use_bf16=use_bf16_mxu,
                         per_tap_threshold=per_tap_threshold)
    sc2, sh2 = _bn_finalize(st2, g2p, be2p, count)
    return y2, sc2, sh2


def double_conv(x_nchw, params, use_bf16_mxu=False, per_tap_threshold=256):
    """Forward pass of DoubleConv (Conv3x3 -> BN(train) -> ReLU, twice), NCHW."""
    w1, b1, g1, be1, w2, b2, g2, be2 = params
    # Conv bias is cancelled exactly by the training-mode BatchNorm batch-mean
    # subtraction that immediately follows each conv, so it is not applied.
    del b1, b2

    N, cin, H, W = x_nchw.shape
    c1 = w1.shape[-1]
    Hp, Wp = H + 2, W + 2
    P = _round_up(Hp * Wp, LANE)
    align = 16 if use_bf16_mxu else 8          # bf16 packs 2 rows per sublane
    cin_pad = _round_up(cin, align)
    c1_pad = _round_up(c1, align)              # minimal pad only; no extra
    count = float(N * H * W)
    compute_dtype = jnp.bfloat16 if use_bf16_mxu else jnp.float32

    # NCHW already has channels ahead of spatial -> no transpose; pad channels
    # to a sublane multiple, spatial by the conv halo, pixels to a lane multiple.
    # TODO(synk): in a chained UNet, keep this padded (N, C_pad, P) layout as
    # the inter-layer convention (call double_conv_padded directly) so this pad
    # and the final un-pad happen once per network, not once per DoubleConv.
    xp = jnp.pad(x_nchw.astype(jnp.float32),
                 ((0, 0), (0, cin_pad - cin), (1, 1), (1, 1)))
    xp = xp.reshape(N, cin_pad, Hp * Wp)
    xp = jnp.pad(xp, ((0, 0), (0, 0), (0, P - Hp * Wp))).astype(compute_dtype)

    # static interior-pixel mask: 1.0 on the original HxW pixels of each frame
    pix = np.arange(P)
    row, col = pix // Wp, pix % Wp
    interior = ((pix < Hp * Wp) & (row >= 1) & (row <= Hp - 2)
                & (col >= 1) & (col <= Wp - 2))
    mask = jnp.asarray(interior.astype(np.float32)).reshape(1, P)

    def w_to_mat(w, ci, ci_pad, co, co_pad):
        # (3,3,ci,co) HWIO -> (co_pad, 9*ci_pad), tap-major / channel-minor;
        # pre-cast to the MXU dtype so no per-grid-step VPU cast is needed.
        wt = jnp.transpose(w, (3, 0, 1, 2)).astype(jnp.float32)
        wt = jnp.pad(wt, ((0, co_pad - co), (0, 0), (0, 0), (0, ci_pad - ci)))
        return wt.reshape(co_pad, 9 * ci_pad).astype(compute_dtype)

    w1m = w_to_mat(w1, cin, cin_pad, c1, c1_pad)
    w2m = w_to_mat(w2, c1, c1_pad, c1, c1_pad)
    pad_vec = lambda v: jnp.pad(v.astype(jnp.float32), (0, c1_pad - c1))
    g1p, be1p, g2p, be2p = map(pad_vec, (g1, be1, g2, be2))

    y2, sc2, sh2 = double_conv_padded(
        xp, mask, w1m, w2m, g1p, be1p, g2p, be2p, Wp=Wp, P=P, count=count,
        use_bf16_mxu=use_bf16_mxu, per_tap_threshold=per_tap_threshold)

    # Standalone-NCHW epilogue only: BN2 + ReLU as a lane-tiled Pallas pass
    # that also drops the channel padding in-kernel (lane-dense output).
    PT = _lane_tile(P)
    out_flat = pl.pallas_call(
        _make_bn_relu_kernel(c1),
        out_shape=jax.ShapeDtypeStruct((N, c1, P), jnp.float32),
        grid_spec=pltpu.PrefetchScalarGridSpec(
            num_scalar_prefetch=0,
            grid=(N, P // PT),
            in_specs=[pl.BlockSpec((1, c1_pad, PT), lambda n, t: (n, 0, t)),
                      pl.BlockSpec((c1_pad, 1), lambda n, t: (0, 0)),
                      pl.BlockSpec((c1_pad, 1), lambda n, t: (0, 0))],
            out_specs=pl.BlockSpec((1, c1, PT), lambda n, t: (n, 0, t)),
        ),
        compiler_params=pltpu.CompilerParams(
            dimension_semantics=("parallel", "parallel"),
            vmem_limit_bytes=_vmem_limit_bytes()),
    )(y2, sc2, sh2)

    # TODO(synk): fold this spatial un-pad into the epilogue kernel once Mosaic
    # reshape constraints allow writing (H, W) rows directly; chained use via
    # double_conv_padded skips both the epilogue pass and this copy entirely.
    out = out_flat[:, :, :Hp * Wp].reshape(N, c1, Hp, Wp)[:, :, 1:-1, 1:-1]
    return out


def ref_double_conv(x_nchw, params):
    # Pure-JAX reference (exact module semantics, incl. bias) for correctness.
    w1, b1, g1, be1, w2, b2, g2, be2 = params

    def conv(x, w, b):
        y = lax.conv_general_dilated(
            x, w, window_strides=(1, 1), padding=((1, 1), (1, 1)),
            dimension_numbers=("NHWC", "HWIO", "NHWC"))
        return y + b

    def bn_relu(y, g, be):
        mean = jnp.mean(y, axis=(0, 1, 2), keepdims=True)
        var = jnp.mean(jnp.square(y - mean), axis=(0, 1, 2), keepdims=True)
        return jnp.maximum((y - mean) * lax.rsqrt(var + EPS) * g + be, 0.0)

    x = jnp.transpose(x_nchw, (0, 2, 3, 1)).astype(jnp.float32)
    y = bn_relu(conv(x, w1, b1), g1, be1)
    y = bn_relu(conv(y, w2, b2), g2, be2)
    return jnp.transpose(y, (0, 3, 1, 2))


if __name__ == "__main__":
    in_ch, out_ch = 4, 8
    N, H, W = 2, 16, 16

    key = jax.random.PRNGKey(0)
    ks = jax.random.split(key, 9)
    w1 = 0.1 * jax.random.normal(ks[0], (3, 3, in_ch, out_ch), jnp.float32)
    b1 = 0.1 * jax.random.normal(ks[1], (out_ch,), jnp.float32)
    g1 = 1.0 + 0.1 * jax.random.normal(ks[2], (out_ch,), jnp.float32)
    be1 = 0.1 * jax.random.normal(ks[3], (out_ch,), jnp.float32)
    w2 = 0.1 * jax.random.normal(ks[4], (3, 3, out_ch, out_ch), jnp.float32)
    b2 = 0.1 * jax.random.normal(ks[5], (out_ch,), jnp.float32)
    g2 = 1.0 + 0.1 * jax.random.normal(ks[6], (out_ch,), jnp.float32)
    be2 = 0.1 * jax.random.normal(ks[7], (out_ch,), jnp.float32)
    x = jax.random.normal(ks[8], (N, in_ch, H, W), jnp.float32)
    params = (w1, b1, g1, be1, w2, b2, g2, be2)

    ref = jax.block_until_ready(ref_double_conv(x, params))

    # 1) f32, concatenated-im2col path (bit-accurate vs the reference)
    out = jax.block_until_ready(jax.jit(double_conv)(x, params))
    assert out.shape == (N, out_ch, H, W)
    np.testing.assert_allclose(np.asarray(out), np.asarray(ref),
                               atol=1e-4, rtol=1e-4)

    # 2) f32, per-tap accumulation path (large-Cin fallback, forced here)
    out_pt = jax.block_until_ready(
        jax.jit(functools.partial(double_conv, per_tap_threshold=0))(x, params))
    np.testing.assert_allclose(np.asarray(out_pt), np.asarray(ref),
                               atol=1e-4, rtol=1e-4)

    # 3) bf16 MXU + bf16 intermediate activations (loose tolerance)
    out_bf = jax.block_until_ready(
        jax.jit(functools.partial(double_conv, use_bf16_mxu=True))(x, params))
    np.testing.assert_allclose(np.asarray(out_bf), np.asarray(ref),
                               atol=7e-2, rtol=7e-2)

    print("KERNEL_OK")
</pallas_src>

<mosaic_0001>
module attributes {stable_mosaic.version = 11 : i64} {
  func.func @kernel(%arg0: i32, %arg1: memref<1x8x384xf32, #tpu.memory_space<vmem>>, %arg2: memref<8x72xf32, #tpu.memory_space<vmem>>, %arg3: memref<1x384xf32, #tpu.memory_space<vmem>>, %arg4: memref<1x8x384xf32, #tpu.memory_space<vmem>>, %arg5: memref<1x16x128xf32, #tpu.memory_space<vmem>>) attributes {dimension_semantics = [#tpu.dimension_semantics<parallel>], iteration_bounds = array<i64: 2>, scalar_prefetch = 0 : i64, scratch_operands = 0 : i64, tpu.core_type = #tpu.core_type<tc>, window_params = [{transform_indices = @transform_0, window_bounds = array<i64: 1, 8, 384>}, {pipeline_mode = #tpu.pipeline_mode<synchronous>, transform_indices = @transform_1, window_bounds = array<i64: 8, 72>}, {pipeline_mode = #tpu.pipeline_mode<synchronous>, transform_indices = @transform_2, window_bounds = array<i64: 1, 384>}, {transform_indices = @transform_3, window_bounds = array<i64: 1, 8, 384>}, {transform_indices = @transform_4, window_bounds = array<i64: 1, 16, 128>}]} {
    %c0 = arith.constant 0 : index
    %c0_0 = arith.constant 0 : index
    %0 = vector.load %arg3[%c0, %c0_0] : memref<1x384xf32, #tpu.memory_space<vmem>>, vector<1x384xf32>
    %c0_1 = arith.constant 0 : index
    %c0_2 = arith.constant 0 : index
    %c0_3 = arith.constant 0 : index
    %1 = vector.load %arg1[%c0_1, %c0_2, %c0_3] : memref<1x8x384xf32, #tpu.memory_space<vmem>>, vector<1x8x384xf32>
    %2 = vector.shape_cast %1 : vector<1x8x384xf32> to vector<8x384xf32>
    %c0_4 = arith.constant 0 : index
    %c0_5 = arith.constant 0 : index
    %3 = vector.load %arg2[%c0_4, %c0_5] : memref<8x72xf32, #tpu.memory_space<vmem>>, vector<8x72xf32>
    %c19_i32 = arith.constant 19 : i32
    %4 = tpu.dynamic_rotate %2 by %c19_i32 dim 1 : vector<8x384xf32>, i32 -> vector<8x384xf32>
    %c18_i32 = arith.constant 18 : i32
    %5 = tpu.dynamic_rotate %2 by %c18_i32 dim 1 : vector<8x384xf32>, i32 -> vector<8x384xf32>
    %c17_i32 = arith.constant 17 : i32
    %6 = tpu.dynamic_rotate %2 by %c17_i32 dim 1 : vector<8x384xf32>, i32 -> vector<8x384xf32>
    %c1_i32 = arith.constant 1 : i32
    %7 = tpu.dynamic_rotate %2 by %c1_i32 dim 1 : vector<8x384xf32>, i32 -> vector<8x384xf32>
    %c383_i32 = arith.constant 383 : i32
    %8 = tpu.dynamic_rotate %2 by %c383_i32 dim 1 : vector<8x384xf32>, i32 -> vector<8x384xf32>
    %c367_i32 = arith.constant 367 : i32
    %9 = tpu.dynamic_rotate %2 by %c367_i32 dim 1 : vector<8x384xf32>, i32 -> vector<8x384xf32>
    %c366_i32 = arith.constant 366 : i32
    %10 = tpu.dynamic_rotate %2 by %c366_i32 dim 1 : vector<8x384xf32>, i32 -> vector<8x384xf32>
    %c365_i32 = arith.constant 365 : i32
    %11 = tpu.dynamic_rotate %2 by %c365_i32 dim 1 : vector<8x384xf32>, i32 -> vector<8x384xf32>
    %12 = tpu.concatenate %4, %5, %6, %7, %2, %8, %9, %10, %11 in 0 : vector<8x384xf32>, vector<8x384xf32>, vector<8x384xf32>, vector<8x384xf32>, vector<8x384xf32>, vector<8x384xf32>, vector<8x384xf32>, vector<8x384xf32>, vector<8x384xf32> -> vector<72x384xf32>
    %cst = arith.constant dense<0.000000e+00> : vector<8x384xf32>
    %13 = tpu.matmul %3, %12, %cst {dimension_numbers = #tpu.dot_dimension_numbers<[1], [0], [0], [1], [0, 0, 1, 1], [], []>} : vector<8x72xf32>, vector<72x384xf32>, vector<8x384xf32> -> vector<8x384xf32>
    %14 = vector.broadcast %0 : vector<1x384xf32> to vector<8x384xf32>
    %15 = arith.mulf %13, %14 : vector<8x384xf32>
    %c0_6 = arith.constant 0 : index
    %c0_7 = arith.constant 0 : index
    %c0_8 = arith.constant 0 : index
    %16 = vector.load %arg4[%c0_6, %c0_7, %c0_8] : memref<1x8x384xf32, #tpu.memory_space<vmem>>, vector<1x8x384xf32>
    %17 = vector.shape_cast %16 : vector<1x8x384xf32> to vector<8x384xf32>
    %18 = vector.shape_cast %15 : vector<8x384xf32> to vector<1x8x384xf32>
    tpu.vector_store %arg4[%c0_6, %c0_7, %c0_8], %18 {strides = array<i32>} : memref<1x8x384xf32, #tpu.memory_space<vmem>>, vector<1x8x384xf32>,
    %c0_9 = arith.constant 0 : index
    %c0_10 = arith.constant 0 : index
    %c0_11 = arith.constant 0 : index
    %19 = vector.load %arg4[%c0_9, %c0_10, %c0_11] : memref<1x8x384xf32, #tpu.memory_space<vmem>>, vector<1x8x128xf32>
    %20 = vector.shape_cast %19 : vector<1x8x128xf32> to vector<8x128xf32>
    %21 = arith.mulf %20, %20 : vector<8x128xf32>
    %c1_i32_12 = arith.constant 1 : i32
    %c128_i32 = arith.constant 128 : i32
    %22 = arith.muli %c1_i32_12, %c128_i32 : i32
    %23 = tpu.assume_multiple %22, 128 : i32
    %c0_13 = arith.constant 0 : index
    %c0_14 = arith.constant 0 : index
    %24 = arith.index_cast %23 : i32 to index
    %25 = vector.load %arg4[%c0_13, %c0_14, %24] : memref<1x8x384xf32, #tpu.memory_space<vmem>>, vector<1x8x128xf32>
    %26 = vector.shape_cast %25 : vector<1x8x128xf32> to vector<8x128xf32>
    %27 = arith.addf %20, %26 : vector<8x128xf32>
    %28 = arith.mulf %26, %26 : vector<8x128xf32>
    %29 = arith.addf %21, %28 : vector<8x128xf32>
    %c2_i32 = arith.constant 2 : i32
    %c128_i32_15 = arith.constant 128 : i32
    %30 = arith.muli %c2_i32, %c128_i32_15 : i32
    %31 = tpu.assume_multiple %30, 128 : i32
    %c0_16 = arith.constant 0 : index
    %c0_17 = arith.constant 0 : index
    %32 = arith.index_cast %31 : i32 to index
    %33 = vector.load %arg4[%c0_16, %c0_17, %32] : memref<1x8x384xf32, #tpu.memory_space<vmem>>, vector<1x8x128xf32>
    %34 = vector.shape_cast %33 : vector<1x8x128xf32> to vector<8x128xf32>
    %35 = arith.addf %27, %34 : vector<8x128xf32>
    %36 = arith.mulf %34, %34 : vector<8x128xf32>
    %37 = arith.addf %29, %36 : vector<8x128xf32>
    %c2_i32_18 = arith.constant 2 : i32
    %c0_19 = arith.constant 0 : index
    %c0_20 = arith.constant 0 : index
    %c0_21 = arith.constant 0 : index
    %38 = vector.load %arg5[%c0_19, %c0_20, %c0_21] : memref<1x16x128xf32, #tpu.memory_space<vmem>>, vector<1x8x128xf32>
    %39 = vector.shape_cast %38 : vector<1x8x128xf32> to vector<8x128xf32>
    %40 = vector.shape_cast %35 : vector<8x128xf32> to vector<1x8x128xf32>
    tpu.vector_store %arg5[%c0_19, %c0_20, %c0_21], %40 {strides = array<i32>} : memref<1x16x128xf32, #tpu.memory_space<vmem>>, vector<1x8x128xf32>,
    %c0_22 = arith.constant 0 : index
    %c8 = arith.constant 8 : index
    %c0_23 = arith.constant 0 : index
    %41 = vector.load %arg5[%c0_22, %c8, %c0_23] : memref<1x16x128xf32, #tpu.memory_space<vmem>>, vector<1x8x128xf32>
    %42 = vector.shape_cast %41 : vector<1x8x128xf32> to vector<8x128xf32>
    %43 = vector.shape_cast %37 : vector<8x128xf32> to vector<1x8x128xf32>
    tpu.vector_store %arg5[%c0_22, %c8, %c0_23], %43 {strides = array<i32>} : memref<1x16x128xf32, #tpu.memory_space<vmem>>, vector<1x8x128xf32>,
    return
  }
  func.func @transform_0(%arg0: i32) -> (i32, i32, i32) {
    %c0_i32 = arith.constant 0 : i32
    %c0_i32_0 = arith.constant 0 : i32
    %c0_i32_1 = arith.constant 0 : i32
    return %arg0, %c0_i32, %c0_i32_0 : i32, i32, i32
  }
  func.func @transform_1(%arg0: i32) -> (i32, i32) {
    %c0_i32 = arith.constant 0 : i32
    %c0_i32_0 = arith.constant 0 : i32
    %c0_i32_1 = arith.constant 0 : i32
    return %c0_i32, %c0_i32_0 : i32, i32
  }
  func.func @transform_2(%arg0: i32) -> (i32, i32) {
    %c0_i32 = arith.constant 0 : i32
    %c0_i32_0 = arith.constant 0 : i32
    %c0_i32_1 = arith.constant 0 : i32
    return %c0_i32, %c0_i32_0 : i32, i32
  }
  func.func @transform_3(%arg0: i32) -> (i32, i32, i32) {
    %c0_i32 = arith.constant 0 : i32
    %c0_i32_0 = arith.constant 0 : i32
    %c0_i32_1 = arith.constant 0 : i32
    return %arg0, %c0_i32, %c0_i32_0 : i32, i32, i32
  }
  func.func @transform_4(%arg0: i32) -> (i32, i32, i32) {
    %c0_i32 = arith.constant 0 : i32
    %c0_i32_0 = arith.constant 0 : i32
    %c0_i32_1 = arith.constant 0 : i32
    return %arg0, %c0_i32, %c0_i32_0 : i32, i32, i32
  }
}

module attributes {stable_mosaic.version = 11 : i64} {
  func.func @kernel(%arg0: i32, %arg1: memref<1x8x384xf32, #tpu.memory_space<vmem>>, %arg2: memref<8x72xf32, #tpu.memory_space<vmem>>, %arg3: memref<8x1xf32, #tpu.memory_space<vmem>>, %arg4: memref<8x1xf32, #tpu.memory_space<vmem>>, %arg5: memref<1x384xf32, #tpu.memory_space<vmem>>, %arg6: memref<1x8x384xf32, #tpu.memory_space<vmem>>, %arg7: memref<1x16x128xf32, #tpu.memory_space<vmem>>) attributes {dimension_semantics = [#tpu.dimension_semantics<parallel>], iteration_bounds = array<i64: 2>, scalar_prefetch = 0 : i64, scratch_operands = 0 : i64, tpu.core_type = #tpu.core_type<tc>, window_params = [{transform_indices = @transform_0, window_bounds = array<i64: 1, 8, 384>}, {pipeline_mode = #tpu.pipeline_mode<synchronous>, transform_indices = @transform_1, window_bounds = array<i64: 8, 72>}, {pipeline_mode = #tpu.pipeline_mode<synchronous>, transform_indices = @transform_2, window_bounds = array<i64: 8, 1>}, {pipeline_mode = #tpu.pipeline_mode<synchronous>, transform_indices = @transform_3, window_bounds = array<i64: 8, 1>}, {pipeline_mode = #tpu.pipeline_mode<synchronous>, transform_indices = @transform_4, window_bounds = array<i64: 1, 384>}, {transform_indices = @transform_5, window_bounds = array<i64: 1, 8, 384>}, {transform_indices = @transform_6, window_bounds = array<i64: 1, 16, 128>}]} {
    %c0 = arith.constant 0 : index
    %c0_0 = arith.constant 0 : index
    %0 = vector.load %arg5[%c0, %c0_0] : memref<1x384xf32, #tpu.memory_space<vmem>>, vector<1x384xf32>
    %c0_1 = arith.constant 0 : index
    %c0_2 = arith.constant 0 : index
    %c0_3 = arith.constant 0 : index
    %1 = vector.load %arg1[%c0_1, %c0_2, %c0_3] : memref<1x8x384xf32, #tpu.memory_space<vmem>>, vector<1x8x384xf32>
    %2 = vector.shape_cast %1 : vector<1x8x384xf32> to vector<8x384xf32>
    %c0_4 = arith.constant 0 : index
    %c0_5 = arith.constant 0 : index
    %3 = vector.load %arg3[%c0_4, %c0_5] : memref<8x1xf32, #tpu.memory_space<vmem>>, vector<8x1xf32>
    %4 = vector.broadcast %3 : vector<8x1xf32> to vector<8x384xf32>
    %5 = arith.mulf %2, %4 : vector<8x384xf32>
    %c0_6 = arith.constant 0 : index
    %c0_7 = arith.constant 0 : index
    %6 = vector.load %arg4[%c0_6, %c0_7] : memref<8x1xf32, #tpu.memory_space<vmem>>, vector<8x1xf32>
    %7 = vector.broadcast %6 : vector<8x1xf32> to vector<8x384xf32>
    %8 = arith.addf %5, %7 : vector<8x384xf32>
    %cst = arith.constant 0.000000e+00 : f32
    %9 = vector.broadcast %cst : f32 to vector<8x384xf32>
    %10 = arith.maximumf %8, %9 : vector<8x384xf32>
    %11 = vector.broadcast %0 : vector<1x384xf32> to vector<8x384xf32>
    %12 = arith.mulf %10, %11 : vector<8x384xf32>
    %c0_8 = arith.constant 0 : index
    %c0_9 = arith.constant 0 : index
    %13 = vector.load %arg2[%c0_8, %c0_9] : memref<8x72xf32, #tpu.memory_space<vmem>>, vector<8x72xf32>
    %c19_i32 = arith.constant 19 : i32
    %14 = tpu.dynamic_rotate %12 by %c19_i32 dim 1 : vector<8x384xf32>, i32 -> vector<8x384xf32>
    %c18_i32 = arith.constant 18 : i32
    %15 = tpu.dynamic_rotate %12 by %c18_i32 dim 1 : vector<8x384xf32>, i32 -> vector<8x384xf32>
    %c17_i32 = arith.constant 17 : i32
    %16 = tpu.dynamic_rotate %12 by %c17_i32 dim 1 : vector<8x384xf32>, i32 -> vector<8x384xf32>
    %c1_i32 = arith.constant 1 : i32
    %17 = tpu.dynamic_rotate %12 by %c1_i32 dim 1 : vector<8x384xf32>, i32 -> vector<8x384xf32>
    %c383_i32 = arith.constant 383 : i32
    %18 = tpu.dynamic_rotate %12 by %c383_i32 dim 1 : vector<8x384xf32>, i32 -> vector<8x384xf32>
    %c367_i32 = arith.constant 367 : i32
    %19 = tpu.dynamic_rotate %12 by %c367_i32 dim 1 : vector<8x384xf32>, i32 -> vector<8x384xf32>
    %c366_i32 = arith.constant 366 : i32
    %20 = tpu.dynamic_rotate %12 by %c366_i32 dim 1 : vector<8x384xf32>, i32 -> vector<8x384xf32>
    %c365_i32 = arith.constant 365 : i32
    %21 = tpu.dynamic_rotate %12 by %c365_i32 dim 1 : vector<8x384xf32>, i32 -> vector<8x384xf32>
    %22 = tpu.concatenate %14, %15, %16, %17, %12, %18, %19, %20, %21 in 0 : vector<8x384xf32>, vector<8x384xf32>, vector<8x384xf32>, vector<8x384xf32>, vector<8x384xf32>, vector<8x384xf32>, vector<8x384xf32>, vector<8x384xf32>, vector<8x384xf32> -> vector<72x384xf32>
    %cst_10 = arith.constant dense<0.000000e+00> : vector<8x384xf32>
    %23 = tpu.matmul %13, %22, %cst_10 {dimension_numbers = #tpu.dot_dimension_numbers<[1], [0], [0], [1], [0, 0, 1, 1], [], []>} : vector<8x72xf32>, vector<72x384xf32>, vector<8x384xf32> -> vector<8x384xf32>
    %24 = vector.broadcast %0 : vector<1x384xf32> to vector<8x384xf32>
    %25 = arith.mulf %23, %24 : vector<8x384xf32>
    %c0_11 = arith.constant 0 : index
    %c0_12 = arith.constant 0 : index
    %c0_13 = arith.constant 0 : index
    %26 = vector.load %arg6[%c0_11, %c0_12, %c0_13] : memref<1x8x384xf32, #tpu.memory_space<vmem>>, vector<1x8x384xf32>
    %27 = vector.shape_cast %26 : vector<1x8x384xf32> to vector<8x384xf32>
    %28 = vector.shape_cast %25 : vector<8x384xf32> to vector<1x8x384xf32>
    tpu.vector_store %arg6[%c0_11, %c0_12, %c0_13], %28 {strides = array<i32>} : memref<1x8x384xf32, #tpu.memory_space<vmem>>, vector<1x8x384xf32>,
    %c0_14 = arith.constant 0 : index
    %c0_15 = arith.constant 0 : index
    %c0_16 = arith.constant 0 : index
    %29 = vector.load %arg6[%c0_14, %c0_15, %c0_16] : memref<1x8x384xf32, #tpu.memory_space<vmem>>, vector<1x8x128xf32>
    %30 = vector.shape_cast %29 : vector<1x8x128xf32> to vector<8x128xf32>
    %31 = arith.mulf %30, %30 : vector<8x128xf32>
    %c1_i32_17 = arith.constant 1 : i32
    %c128_i32 = arith.constant 128 : i32
    %32 = arith.muli %c1_i32_17, %c128_i32 : i32
    %33 = tpu.assume_multiple %32, 128 : i32
    %c0_18 = arith.constant 0 : index
    %c0_19 = arith.constant 0 : index
    %34 = arith.index_cast %33 : i32 to index
    %35 = vector.load %arg6[%c0_18, %c0_19, %34] : memref<1x8x384xf32, #tpu.memory_space<vmem>>, vector<1x8x128xf32>
    %36 = vector.shape_cast %35 : vector<1x8x128xf32> to vector<8x128xf32>
    %37 = arith.addf %30, %36 : vector<8x128xf32>
    %38 = arith.mulf %36, %36 : vector<8x128xf32>
    %39 = arith.addf %31, %38 : vector<8x128xf32>
    %c2_i32 = arith.constant 2 : i32
    %c128_i32_20 = arith.constant 128 : i32
    %40 = arith.muli %c2_i32, %c128_i32_20 : i32
    %41 = tpu.assume_multiple %40, 128 : i32
    %c0_21 = arith.constant 0 : index
    %c0_22 = arith.constant 0 : index
    %42 = arith.index_cast %41 : i32 to index
    %43 = vector.load %arg6[%c0_21, %c0_22, %42] : memref<1x8x384xf32, #tpu.memory_space<vmem>>, vector<1x8x128xf32>
    %44 = vector.shape_cast %43 : vector<1x8x128xf32> to vector<8x128xf32>
    %45 = arith.addf %37, %44 : vector<8x128xf32>
    %46 = arith.mulf %44, %44 : vector<8x128xf32>
    %47 = arith.addf %39, %46 : vector<8x128xf32>
    %c2_i32_23 = arith.constant 2 : i32
    %c0_24 = arith.constant 0 : index
    %c0_25 = arith.constant 0 : index
    %c0_26 = arith.constant 0 : index
    %48 = vector.load %arg7[%c0_24, %c0_25, %c0_26] : memref<1x16x128xf32, #tpu.memory_space<vmem>>, vector<1x8x128xf32>
    %49 = vector.shape_cast %48 : vector<1x8x128xf32> to vector<8x128xf32>
    %50 = vector.shape_cast %45 : vector<8x128xf32> to vector<1x8x128xf32>
    tpu.vector_store %arg7[%c0_24, %c0_25, %c0_26], %50 {strides = array<i32>} : memref<1x16x128xf32, #tpu.memory_space<vmem>>, vector<1x8x128xf32>,
    %c0_27 = arith.constant 0 : index
    %c8 = arith.constant 8 : index
    %c0_28 = arith.constant 0 : index
    %51 = vector.load %arg7[%c0_27, %c8, %c0_28] : memref<1x16x128xf32, #tpu.memory_space<vmem>>, vector<1x8x128xf32>
    %52 = vector.shape_cast %51 : vector<1x8x128xf32> to vector<8x128xf32>
    %53 = vector.shape_cast %47 : vector<8x128xf32> to vector<1x8x128xf32>
    tpu.vector_store %arg7[%c0_27, %c8, %c0_28], %53 {strides = array<i32>} : memref<1x16x128xf32, #tpu.memory_space<vmem>>, vector<1x8x128xf32>,
    return
  }
  func.func @transform_0(%arg0: i32) -> (i32, i32, i32) {
    %c0_i32 = arith.constant 0 : i32
    %c0_i32_0 = arith.constant 0 : i32
    %c0_i32_1 = arith.constant 0 : i32
    return %arg0, %c0_i32, %c0_i32_0 : i32, i32, i32
  }
  func.func @transform_1(%arg0: i32) -> (i32, i32) {
    %c0_i32 = arith.constant 0 : i32
    %c0_i32_0 = arith.constant 0 : i32
    %c0_i32_1 = arith.constant 0 : i32
    return %c0_i32, %c0_i32_0 : i32, i32
  }
  func.func @transform_2(%arg0: i32) -> (i32, i32) {
    %c0_i32 = arith.constant 0 : i32
    %c0_i32_0 = arith.constant 0 : i32
    %c0_i32_1 = arith.constant 0 : i32
    return %c0_i32, %c0_i32_0 : i32, i32
  }
  func.func @transform_3(%arg0: i32) -> (i32, i32) {
    %c0_i32 = arith.constant 0 : i32
    %c0_i32_0 = arith.constant 0 : i32
    %c0_i32_1 = arith.constant 0 : i32
    return %c0_i32, %c0_i32_0 : i32, i32
  }
  func.func @transform_4(%arg0: i32) -> (i32, i32) {
    %c0_i32 = arith.constant 0 : i32
    %c0_i32_0 = arith.constant 0 : i32
    %c0_i32_1 = arith.constant 0 : i32
    return %c0_i32, %c0_i32_0 : i32, i32
  }
  func.func @transform_5(%arg0: i32) -> (i32, i32, i32) {
    %c0_i32 = arith.constant 0 : i32
    %c0_i32_0 = arith.constant 0 : i32
    %c0_i32_1 = arith.constant 0 : i32
    return %arg0, %c0_i32, %c0_i32_0 : i32, i32, i32
  }
  func.func @transform_6(%arg0: i32) -> (i32, i32, i32) {
    %c0_i32 = arith.constant 0 : i32
    %c0_i32_0 = arith.constant 0 : i32
    %c0_i32_1 = arith.constant 0 : i32
    return %arg0, %c0_i32, %c0_i32_0 : i32, i32, i32
  }
}

module attributes {stable_mosaic.version = 11 : i64} {
  func.func @kernel(%arg0: i32, %arg1: i32, %arg2: memref<1x8x384xf32, #tpu.memory_space<vmem>>, %arg3: memref<8x1xf32, #tpu.memory_space<vmem>>, %arg4: memref<8x1xf32, #tpu.memory_space<vmem>>, %arg5: memref<1x8x384xf32, #tpu.memory_space<vmem>>) attributes {dimension_semantics = [#tpu.dimension_semantics<parallel>, #tpu.dimension_semantics<parallel>], iteration_bounds = array<i64: 2, 1>, scalar_prefetch = 0 : i64, scratch_operands = 0 : i64, tpu.core_type = #tpu.core_type<tc>, window_params = [{transform_indices = @transform_0, window_bounds = array<i64: 1, 8, 384>}, {pipeline_mode = #tpu.pipeline_mode<synchronous>, transform_indices = @transform_1, window_bounds = array<i64: 8, 1>}, {pipeline_mode = #tpu.pipeline_mode<synchronous>, transform_indices = @transform_2, window_bounds = array<i64: 8, 1>}, {transform_indices = @transform_3, window_bounds = array<i64: 1, 8, 384>}]} {
    %c0 = arith.constant 0 : index
    %c0_0 = arith.constant 0 : index
    %c0_1 = arith.constant 0 : index
    %0 = vector.load %arg2[%c0, %c0_0, %c0_1] : memref<1x8x384xf32, #tpu.memory_space<vmem>>, vector<1x8x384xf32>
    %1 = vector.shape_cast %0 : vector<1x8x384xf32> to vector<8x384xf32>
    %c0_2 = arith.constant 0 : index
    %c0_3 = arith.constant 0 : index
    %2 = vector.load %arg3[%c0_2, %c0_3] : memref<8x1xf32, #tpu.memory_space<vmem>>, vector<8x1xf32>
    %3 = vector.broadcast %2 : vector<8x1xf32> to vector<8x384xf32>
    %4 = arith.mulf %1, %3 : vector<8x384xf32>
    %c0_4 = arith.constant 0 : index
    %c0_5 = arith.constant 0 : index
    %5 = vector.load %arg4[%c0_4, %c0_5] : memref<8x1xf32, #tpu.memory_space<vmem>>, vector<8x1xf32>
    %6 = vector.broadcast %5 : vector<8x1xf32> to vector<8x384xf32>
    %7 = arith.addf %4, %6 : vector<8x384xf32>
    %cst = arith.constant 0.000000e+00 : f32
    %8 = vector.broadcast %cst : f32 to vector<8x384xf32>
    %9 = arith.maximumf %7, %8 : vector<8x384xf32>
    %c0_6 = arith.constant 0 : index
    %c0_7 = arith.constant 0 : index
    %c0_8 = arith.constant 0 : index
    %10 = vector.load %arg5[%c0_6, %c0_7, %c0_8] : memref<1x8x384xf32, #tpu.memory_space<vmem>>, vector<1x8x384xf32>
    %11 = vector.shape_cast %10 : vector<1x8x384xf32> to vector<8x384xf32>
    %12 = vector.shape_cast %9 : vector<8x384xf32> to vector<1x8x384xf32>
    tpu.vector_store %arg5[%c0_6, %c0_7, %c0_8], %12 {strides = array<i32>} : memref<1x8x384xf32, #tpu.memory_space<vmem>>, vector<1x8x384xf32>,
    return
  }
  func.func @transform_0(%arg0: i32, %arg1: i32) -> (i32, i32, i32) {
    %c0_i32 = arith.constant 0 : i32
    %c0_i32_0 = arith.constant 0 : i32
    return %arg0, %c0_i32, %arg1 : i32, i32, i32
  }
  func.func @transform_1(%arg0: i32, %arg1: i32) -> (i32, i32) {
    %c0_i32 = arith.constant 0 : i32
    %c0_i32_0 = arith.constant 0 : i32
    %c0_i32_1 = arith.constant 0 : i32
    return %c0_i32, %c0_i32_0 : i32, i32
  }
  func.func @transform_2(%arg0: i32, %arg1: i32) -> (i32, i32) {
    %c0_i32 = arith.constant 0 : i32
    %c0_i32_0 = arith.constant 0 : i32
    %c0_i32_1 = arith.constant 0 : i32
    return %c0_i32, %c0_i32_0 : i32, i32
  }
  func.func @transform_3(%arg0: i32, %arg1: i32) -> (i32, i32, i32) {
    %c0_i32 = arith.constant 0 : i32
    %c0_i32_0 = arith.constant 0 : i32
    return %arg0, %c0_i32, %arg1 : i32, i32, i32
  }
}

</mosaic_0001>

<bundles_post_ra>
// kernel: double_conv.5
= control target key start
LH: loop header
LB: loop body
LE: loop exit
PB: predicated region body
PF: predicated region fallthrough
CT: control target
= control target key end

     0   :  { %s405_s12 = smov 0   ;;  %s407_s13 = smov 0   ;;  %s444_s0 = inlined_call_operand.vmem [shape: f32[2,8,384], index: 0, kind: input, shape index: {}]   ;;  %s445_s1 = inlined_call_operand.vmem [shape: f32[8,1], index: 1, kind: input, shape index: {}]   ;;  %s446_s2 = inlined_call_operand.vmem [shape: f32[8,1], index: 2, kind: input, shape index: {}]   ;;  %s447_s3 = inlined_call_operand.vmem [shape: f32[2,8,384], index: 3, kind: output, shape index: {}]  }
   0x1   :  { %s409_s14 = smov 0  }
   0x2 LB: > { %s25_s15 = sadd.s32 1, %s378_s13  ;;  %p328_p0 = scmp.ge.s32.totalorder %s382_s14, 1  ;;  %s382_s14 = sphi %s409_s14, %s13_s14   ;;  %s378_s13 = sphi %s407_s13, %s449_s13   ;;  %s374_s12 = sphi %s405_s12, %s448_s12  }
   0x3   : > { %p27_p1 = scmp.ge.s32.totalorder %s25_s15, 2  ;;  %p158_p2 = scmp.lt.s32.totalorder %s382_s14, 3 }
   0x5   : > { %s451_s15 = smov (%p27_p1, %s25_s15), 0  ;;  %p159_p3 = pnand %p328_p0, %p158_p2 }
   0x6   : > { %v213_v0 = vld [vmem:[%s445_s1] sm:$0xff] (!%p159_p3)  ;;  %v384_v1 = vmov (!%p159_p3), 0   ;;  %p191_p4 = scmp.lt.s32.totalorder (!%p159_p3), %s374_s12, 1 }
   0x7   : > { %162 = sbr.rel (%p159_p3) target bundleno = 146 (0x92), region = 32  ;;  %359 = vset.pattern.permute.xlu0 (!%p159_p3), %v384_v1  ;;  %v222_v2 = vld [vmem:[%s446_s2] sm:$0xff] (!%p159_p3) }
   0x8   : > { %216 = vperm.xlu0 (!%p159_p3), %359, %v213_v0  }
   0xc   : > { %225 = vperm.xlu0 (!%p159_p3), %359, %v222_v2  }
   0xe   : > { %s453_s12 = smov (!%p191_p4, %s374_s12), 1 }
   0xf   : > { %s333_s20 = smul.u32 24, %s453_s12 }
  0x11   : > { %s198_s23 = scalar_lea.vmem %s444_s0, %s333_s20  ;;  %s208_s26 = scalar_lea.vmem %s447_s3, %s333_s20 }
  0x12   : > { %v210_v4 = vld [vmem:[%s198_s23] sm:$0xff]  ;;  %v211_v5 = vld [vmem:[%s198_s23 + $0x8] sm:$0xff]  ;;  %v212_v6 = vld [vmem:[%s198_s23 + $0x10] sm:$0xff] }
  0x87   : > { %v217_v3 = vpop.permute.xlu0 %216 }
  0x88   : > { %v219_v7 = vmul.f32 %v217_v3, %v210_v4  ;;  %v220_v8 = vmul.f32 %v217_v3, %v211_v5  ;;  %v221_v9 = vmul.f32 %v217_v3, %v212_v6 }
  0x8b   : > { %v226_v10 = vpop.permute.xlu0 %225 }
  0x8c   : > { %v228_v11 = vadd.f32 %v226_v10, %v219_v7  ;;  %v229_v12 = vadd.f32 %v226_v10, %v220_v8  ;;  %v230_v13 = vadd.f32 %v226_v10, %v221_v9 }
  0x8e   : > { %v231_v14 = vmax.f32 %v228_v11, 0.0  ;;  %v232_v15 = vmax.f32 %v229_v12, 0.0  ;;  %v233_v16 = vmax.f32 %v230_v13, 0.0 }
  0x90   : > { %234 = vst [vmem:[%s208_s26] sm:$0xff] %v231_v14  ;;  %235 = vst [vmem:[%s208_s26 + $0x8] sm:$0xff] %v232_v15 }
  0x91   : > { %236 = vst [vmem:[%s208_s26 + $0x10] sm:$0xff] %v233_v16 }
  0x92 PF: > { %s13_s14 = sadd.s32 1, %s382_s14   ;;  %s448_s12 = smov %s378_s13 }
  0x93   : > { %p10_p5 = scmp.ge.s32.totalorder %s13_s14, 4   ;;  %s449_s13 = smov %s451_s15 }
  0x95   :  { %12 = sbr.rel (!%p10_p5) target bundleno = 2 (0x2), region = 62 }

// kernel: double_conv.4
= control target key start
LH: loop header
LB: loop body
LE: loop exit
PB: predicated region body
PF: predicated region fallthrough
CT: control target
= control target key end

     0   :  { %s832_s21 = smov 0   ;;  %s936_s0 = inlined_call_operand.vmem [shape: f32[2,8,384], index: 0, kind: input, shape index: {}]   ;;  %s937_s1 = inlined_call_operand.vmem [shape: f32[8,72], index: 1, kind: input, shape index: {}]   ;;  %s938_s2 = inlined_call_operand.vmem [shape: f32[8,1], index: 2, kind: input, shape index: {}]   ;;  %s939_s3 = inlined_call_operand.vmem [shape: f32[8,1], index: 3, kind: input, shape index: {}]   ;;  %s940_s4 = inlined_call_operand.vmem [shape: f32[1,384], index: 4, kind: input, shape index: {}]   ;;  %s941_s5 = inlined_call_operand.vmem [shape: f32[2,8,384], index: 5, kind: output, shape index: {0}]   ;;  %s942_s6 = inlined_call_operand.vmem [shape: f32[2,16,128], index: 6, kind: output, shape index: {1}]  }
   0x1 LB: > { %s645_s22 = sadd.s32 4294967295, %s783_s21   ;;  %p649_p0 = scmp.ge.s32.totalorder %s783_s21, 1  ;;  %s783_s21 = sphi %s832_s21, %s17_s21  }
   0x2   : > { %p215_p1 = scmp.lt.s32.totalorder %s783_s21, 3 }
   0x4   : > { %p216_p2 = pnand %p649_p0, %p215_p1 }
   0x5   : > { %v269_v0 = vld [vmem:[%s938_s2] sm:$0xff] (!%p216_p2)  ;;  %v785_v1 = vmov (!%p216_p2), 0   ;;  %p250_p3 = scmp.lt.s32.totalorder (!%p216_p2), %s645_s22, 1  ;;  %v291_v3 = vlaneseq (!%p216_p2)  ;;  %s786_s9 = smov (!%p216_p2), 19   ;;  %v787_v30 = vmov (!%p216_p2), 0.0|0.0   ;;  %v793_v32 = vmov (!%p216_p2), 0.0  }
   0x6   : > { %219 = sbr.rel (%p216_p2) target bundleno = 520 (0x208), region = 40  ;;  %741 = vset.pattern.permute.xlu0 (!%p216_p2), %v785_v1  ;;  %v278_v2 = vld [vmem:[%s939_s3] sm:$0xff] (!%p216_p2)  ;;  %708 = vmatprep.subr.bf16.mxu1 (!%p216_p2), %v787_v30  ;;  %s788_s10 = smov (!%p216_p2), 17   ;;  %vm796_vm0 = vmmov (!%p216_p2), 0   ;;  %vm392_vm9 = vcmask (!%p216_p2), 588800  }
   0x7   : > { %272 = vperm.xlu0 (!%p216_p2), %741, %v269_v0   ;;  %v292_v4 = vshrl.u32 (!%p216_p2), %v291_v3, 7  ;;  %v265_v12 = vld [vmem:[%s940_s4] sm:$0x7] (!%p216_p2)  ;;  %s789_s11 = smov (!%p216_p2), 18   ;;  %s790_s12 = smov (!%p216_p2), 127   ;;  %460 = vmatprep.mubr.f32.mxu0 (!%p216_p2), %v793_v32  ;;  %v889_v34 = vand.u32 (!%p216_p2), 127, %v291_v3 }
   0x8   : > { %s791_s13 = smov (!%p216_p2), 1   ;;  %s792_s14 = smov (!%p216_p2), 111   ;;  %689 = vmatprep.mubr.msk.f32.mxu1 (!%p216_p2), %vm796_vm0, %v793_v32 }
   0x9   : > { %v293_v9 = vsub.s32 (!%p216_p2), 0, %v292_v4  ;;  %v297_v10 = vsub.s32 (!%p216_p2), 1, %v292_v4  ;;  %v301_v11 = vsub.s32 (!%p216_p2), 2, %v292_v4  ;;  %s794_s15 = smov (!%p216_p2), 109   ;;  %s795_s16 = smov (!%p216_p2), 110   ;;  %vm328_vm1 = vcmp.lt.s32.totalorder (!%p216_p2), %v889_v34, 18 }
   0xa   : > { %vm318_vm2 = vcmp.lt.s32.totalorder (!%p216_p2), %v889_v34, 19  ;;  %vm338_vm3 = vcmp.lt.s32.totalorder (!%p216_p2), %v889_v34, 17  ;;  %vm348_vm4 = vcmp.lt.s32.totalorder (!%p216_p2), %v889_v34, 1  ;;  %vm358_vm5 = vcmp.lt.s32.totalorder (!%p216_p2), %v889_v34, 127 }
   0xb   : > { %281 = vperm.xlu0 (!%p216_p2), %741, %v278_v2   ;;  %v857_v17 = vrot.slane (!%p216_p2), %v265_v12, %v293_v9  ;;  %v859_v18 = vrot.slane (!%p216_p2), %v265_v12, %v297_v10  ;;  %v861_v22 = vrot.slane (!%p216_p2), %v265_v12, %v301_v11  ;;  %vm368_vm6 = vcmp.lt.s32.totalorder (!%p216_p2), %v889_v34, 111 }
   0xc   : > { %vm378_vm7 = vcmp.lt.s32.totalorder (!%p216_p2), %v889_v34, 110  ;;  %vm388_vm8 = vcmp.lt.s32.totalorder (!%p216_p2), %v889_v34, 109 }
   0xd   : > { %s944_s22 = smov (!%p250_p3, %s645_s22), 1 }
   0xe   : > { %s720_s27 = smul.u32 24, %s944_s22  ;;  %s660_s24 = sshll.u32 %s944_s22, 4 }
  0x10   : > { %s254_s30 = scalar_lea.vmem %s936_s0, %s720_s27  ;;  %s259_s23 = scalar_lea.vmem %s941_s5, %s720_s27 }
  0x11   : > { %v266_v6 = vld [vmem:[%s254_s30] sm:$0xff]  ;;  %v267_v7 = vld [vmem:[%s254_s30 + $0x8] sm:$0xff]  ;;  %v268_v8 = vld [vmem:[%s254_s30 + $0x10] sm:$0xff]  ;;  %s264_s27 = scalar_lea.vmem %s942_s6, %s660_s24 }
  0x86   : > { %v273_v5 = vpop.permute.xlu0 %272 }
  0x87   : > { %v275_v13 = vmul.f32 %v273_v5, %v266_v6  ;;  %v276_v14 = vmul.f32 %v273_v5, %v267_v7  ;;  %v277_v15 = vmul.f32 %v273_v5, %v268_v8 }
  0x8a   : > { %v282_v16 = vpop.permute.xlu0 %281 }
  0x8b   : > { %v284_v19 = vadd.f32 %v282_v16, %v275_v13  ;;  %v285_v20 = vadd.f32 %v282_v16, %v276_v14  ;;  %v286_v21 = vadd.f32 %v282_v16, %v277_v15 }
  0x8d   : > { %v287_v23 = vmax.f32 %v284_v19, 0.0  ;;  %v288_v24 = vmax.f32 %v285_v20, 0.0  ;;  %v289_v25 = vmax.f32 %v286_v21, 0.0 }
  0x8f   : > { %v864_v26 = vmul.f32 %v857_v17, %v287_v23  ;;  %v867_v27 = vmul.f32 %v859_v18, %v288_v24  ;;  %v870_v28 = vmul.f32 %v861_v22, %v289_v25 }
  0x91   : > { %314 = vrot.lane.b32.xlu0 %v870_v28, %s786_s9  ;;  %v742_v29 = vpack.i.bf16 %v867_v27, %v864_v26  ;;  %v762_v31 = vpack.i.bf16 %v870_v28, %v867_v27 }
  0x93   : > { %743 = vrot.lane.b32.xlu1 %v742_v29, %s786_s9 }
  0x95   : > { %753 = vrot.lane.b32.xlu0 %v742_v29, %s788_s10 }
  0x97   : > { %748 = vrot.lane.b32.xlu1 %v742_v29, %s789_s11 }
  0x99   : > { %336 = vrot.lane.b32.xlu0 %v870_v28, %s788_s10 }
  0x9b   : > { %326 = vrot.lane.b32.xlu1 %v870_v28, %s789_s11 }
  0x9d   : > { %763 = vrot.lane.b32.xlu0 %v762_v31, %s790_s12 }
  0x9f   : > { %758 = vrot.lane.b32.xlu1 %v742_v29, %s791_s13 }
  0xa1   : > { %768 = vrot.lane.b32.xlu0 %v762_v31, %s792_s14 }
  0xa3   : > { %346 = vrot.lane.b32.xlu1 %v870_v28, %s791_s13 }
  0xa5   : > { %362 = vrot.lane.b32.xlu0 %v864_v26, %s792_s14 }
  0xa7   : > { %352 = vrot.lane.b32.xlu1 %v864_v26, %s790_s12 }
  0xa9   : > { %384 = vrot.lane.b32.xlu0 %v867_v27, %s794_s15 }
  0xab   : > { %773 = vrot.lane.b32.xlu1 %v762_v31, %s795_s16 }
  0xad   : > { %382 = vrot.lane.b32.xlu0 %v864_v26, %s794_s15 }
  0xaf   : > { %372 = vrot.lane.b32.xlu1 %v864_v26, %s795_s16 }
  0xb3   : > { %386 = vrot.lane.b32.xlu1 %v870_v28, %s794_s15 }
 0x103   : > { %v315_v33 = vpop.permute.xlu0 %314 }
 0x105   : > { %v744_v35 = vpop.permute.xlu1 %743 }
 0x106   : > { %v746_v37 = vunpack.i.h.bf16 %v744_v35  ;;  %v745_v38 = vunpack.i.l.bf16 %v744_v35 }
 0x107   : > { %v754_v36 = vpop.permute.xlu0 %753 }
 0x108   : > { %v320_v43 = vsel %vm318_vm2, %v745_v38, %v746_v37  ;;  %v321_v49 = vsel %vm318_vm2, %v315_v33, %v745_v38  ;;  %v319_v50 = vsel %vm318_vm2, %v746_v37, %v315_v33  ;;  %v756_v54 = vunpack.i.h.bf16 %v754_v36 }
 0x109   : > { %v749_v39 = vpop.permute.xlu1 %748  ;;  %v755_v55 = vunpack.i.l.bf16 %v754_v36 }
 0x10a   : > { %v751_v40 = vunpack.i.h.bf16 %v749_v39  ;;  %v750_v41 = vunpack.i.l.bf16 %v749_v39 }
 0x10b   : > { %v337_v42 = vpop.permute.xlu0 %336  ;;  %v340_v62 = vsel %vm338_vm3, %v755_v55, %v756_v54 }
 0x10c   : > { %v330_v44 = vsel %vm328_vm1, %v750_v41, %v751_v40  ;;  %v339_v3 = vsel %vm338_vm3, %v756_v54, %v337_v42  ;;  %v341_v4 = vsel %vm338_vm3, %v337_v42, %v755_v55 }
 0x10d   : > { %v327_v45 = vpop.permute.xlu1 %326  ;;  %v692_v46 = vpack.c.bf16 %v330_v44, %v320_v43 }
 0x10e   : > { %v329_v47 = vsel %vm328_vm1, %v751_v40, %v327_v45  ;;  %v331_v48 = vsel %vm328_vm1, %v327_v45, %v750_v41  ;;  %v309_v40 = vld [vmem:[%s937_s1] sm:$0xff] }
 0x10f   : > { %v764_v51 = vpop.permute.xlu0 %763  ;;  %693 = vmatprep.subr.bf16.mxu0 %v692_v46  ;;  %v694_v52 = vpack.c.bf16 %v331_v48, %v321_v49  ;;  %v709_v53 = vpack.c.bf16 %v329_v47, %v319_v50 }
 0x110   : > { %v766_v56 = vunpack.i.h.bf16 %v764_v51  ;;  %v765_v57 = vunpack.i.l.bf16 %v764_v51 }
 0x111   : > { %v759_v58 = vpop.permute.xlu1 %758  ;;  %695 = vmatpush1.bf16.msra.mxu0 %v694_v52  ;;  %710 = vmatpush3.bf16.msra.mxu1 %v709_v53 }
 0x112   : > { %v761_v59 = vunpack.i.h.bf16 %v759_v58  ;;  %v760_v60 = vunpack.i.l.bf16 %v759_v58  ;;  %711 = vmatprep.subr.bf16.mxu1 %v787_v30  ;;  %v359_v2 = vsel %vm358_vm5, %v765_v57, %v766_v56 }
 0x113   : > { %v769_v61 = vpop.permute.xlu0 %768  ;;  %v700_v9 = vpack.c.bf16 %v359_v2, %v867_v27 }
 0x114   : > { %v350_v63 = vsel %vm348_vm4, %v760_v60, %v761_v59  ;;  %v771_v16 = vunpack.i.h.bf16 %v769_v61  ;;  %v770_v19 = vunpack.i.l.bf16 %v769_v61 }
 0x115   : > { %v347_v0 = vpop.permute.xlu1 %346  ;;  %v696_v1 = vpack.c.bf16 %v350_v63, %v340_v62 }
 0x116   : > { %v349_v5 = vsel %vm348_vm4, %v761_v59, %v347_v0  ;;  %v351_v6 = vsel %vm348_vm4, %v347_v0, %v760_v60  ;;  %v369_v25 = vsel %vm368_vm6, %v770_v19, %v771_v16 }
 0x117   : > { %v698_v7 = vpack.c.bf16 %v351_v6, %v341_v4  ;;  %v712_v8 = vpack.c.bf16 %v349_v5, %v339_v3  ;;  %697 = vmatprep.subr.bf16.mxu0 %v696_v1  ;;  %v363_v10 = vpop.permute.xlu0 %362 }
 0x118   : > { %v370_v31 = vsel %vm368_vm6, %v363_v10, %v770_v19 }
 0x119   : > { %v353_v11 = vpop.permute.xlu1 %352  ;;  %699 = vmatpush1.bf16.msra.mxu0 %v698_v7  ;;  %713 = vmatpush3.bf16.msra.mxu1 %v712_v8 }
 0x11a   : > { %v360_v12 = vsel %vm358_vm5, %v353_v11, %v765_v57  ;;  %v361_v13 = vsel %vm358_vm5, %v766_v56, %v353_v11  ;;  %701 = vmatprep.subr.bf16.mxu0 %v700_v9  ;;  %714 = vmatprep.subr.bf16.mxu1 %v787_v30 }
 0x11b   : > { %v702_v14 = vpack.c.bf16 %v360_v12, %v864_v26  ;;  %v715_v15 = vpack.c.bf16 %v361_v13, %v870_v28  ;;  %v385_v24 = vpop.permute.xlu0 %384  ;;  %v371_v28 = vsel %vm368_vm6, %v771_v16, %v363_v10 }
 0x11d   : > { %v774_v20 = vpop.permute.xlu1 %773  ;;  %703 = vmatpush1.bf16.msra.mxu0 %v702_v14  ;;  %716 = vmatpush3.bf16.msra.mxu1 %v715_v15 }
 0x11e   : > { %v776_v21 = vunpack.i.h.bf16 %v774_v20  ;;  %v775_v23 = vunpack.i.l.bf16 %v774_v20  ;;  %717 = vmatprep.subr.bf16.mxu1 %v787_v30 }
 0x11f   : > { %v383_v38 = vpop.permute.xlu0 %382 }
 0x120   : > { %v379_v27 = vsel %vm378_vm7, %v775_v23, %v776_v21  ;;  %v390_v41 = vsel %vm388_vm8, %v383_v38, %v385_v24 }
 0x121   : > { %v373_v29 = vpop.permute.xlu1 %372  ;;  %v704_v26 = vpack.c.bf16 %v379_v27, %v369_v25 }
 0x122   : > { %v380_v33 = vsel %vm378_vm7, %v373_v29, %v775_v23  ;;  %v381_v35 = vsel %vm378_vm7, %v776_v21, %v373_v29 }
 0x123   : > { %v706_v36 = vpack.c.bf16 %v380_v33, %v370_v31  ;;  %v718_v37 = vpack.c.bf16 %v381_v35, %v371_v28  ;;  %705 = vmatprep.subr.bf16.mxu0 %v704_v26 }
 0x125   : > { %v387_v39 = vpop.permute.xlu1 %386  ;;  %707 = vmatpush1.bf16.msra.mxu0 %v706_v36  ;;  %719 = vmatpush3.bf16.msra.mxu1 %v718_v37 }
 0x126   : > { %v389_v30 = vsel %vm388_vm8, %v385_v24, %v387_v39  ;;  %687 = vmatprep.subr.mxu1 %v793_v32  ;;  %v391_v42 = vsel %vm388_vm8, %v387_v39, %v383_v38 }
 0x127   : > { %412 = vmatprep.subr.mxu0 %v389_v30 }
 0x129   : > { %413 = vmatpush1.msra.mxu0 %v390_v41  ;;  %688 = vmatpush3.msra.mxu1 %v391_v42 }
 0x12a   : > { %654 = vmatmul.mubr.msk.f32.vlgmr.msra.gmra.mrb[0].mxu0 %vm392_vm9, %v309_v40  ;;  %690 = vmatmul.mubr.msk.f32.vlgmr.msra.gmra.mrb[0].mxu1 %vm392_vm9, %v309_v40 }
 0x1fd   : > { %v462_v34 = vpop.f32.mrb[0].mxu0  ;;  %v533_v32 = vpop.f32.mrb[0].mxu1 }
 0x1fe   : > { %v537_v43 = vmul.f32 %v462_v34, %v857_v17  ;;  %v464_v44 = vpop.f32.mrb[1].mxu0  ;;  %v539_v45 = vmul.f32 %v533_v32, %v861_v22  ;;  %v691_v46 = vpop.f32.mrb[1].mxu1 }
 0x1ff   : > { %v538_v47 = vmul.f32 %v464_v44, %v859_v18 }
 0x200   : > { %540 = vst [vmem:[%s259_s23] sm:$0xff] %v537_v43  ;;  %v544_v48 = vmul.f32 %v537_v43, %v537_v43  ;;  %542 = vst [vmem:[%s259_s23 + $0x10] sm:$0xff] %v539_v45  ;;  %v553_v51 = vmul.f32 %v539_v45, %v539_v45 }
 0x201   : > { %541 = vst [vmem:[%s259_s23 + $0x8] sm:$0xff] %v538_v47  ;;  %v547_v49 = vadd.f32 %v538_v47, %v537_v43  ;;  %v548_v50 = vmul.f32 %v538_v47, %v538_v47 }
 0x203   : > { %v549_v52 = vadd.f32 %v548_v50, %v544_v48  ;;  %v552_v17 = vadd.f32 %v547_v49, %v539_v45 }
 0x205   : > { %v554_v53 = vadd.f32 %v553_v51, %v549_v52  ;;  %555 = vst [vmem:[%s264_s27] sm:$0xff] %v552_v17 }
 0x207   : > { %556 = vst [vmem:[%s264_s27 + $0x8] sm:$0xff] %v554_v53 }
 0x208 PF: > { %s17_s21 = sadd.s32 1, %s783_s21  }
 0x209   : > { %p14_p4 = scmp.ge.s32.totalorder %s17_s21, 4  }
 0x20b   :  { %16 = sbr.rel (!%p14_p4) target bundleno = 1 (0x1), region = 84 }

// kernel: double_conv.3
= control target key start
LH: loop header
LB: loop body
LE: loop exit
PB: predicated region body
PF: predicated region fallthrough
CT: control target
= control target key end

     0   :  { %s741_s15 = smov 0   ;;  %s853_s0 = inlined_call_operand.vmem [shape: f32[2,8,384], index: 0, kind: input, shape index: {}]   ;;  %s854_s1 = inlined_call_operand.vmem [shape: f32[8,72], index: 1, kind: input, shape index: {}]   ;;  %s855_s2 = inlined_call_operand.vmem [shape: f32[1,384], index: 2, kind: input, shape index: {}]   ;;  %s856_s3 = inlined_call_operand.vmem [shape: f32[2,8,384], index: 3, kind: output, shape index: {0}]   ;;  %s857_s4 = inlined_call_operand.vmem [shape: f32[2,16,128], index: 4, kind: output, shape index: {1}]  }
   0x1 LB: > { %s567_s16 = sadd.s32 4294967295, %s703_s15   ;;  %p571_p0 = scmp.ge.s32.totalorder %s703_s15, 1  ;;  %s703_s15 = sphi %s741_s15, %s15_s15  }
   0x2   : > { %p165_p1 = scmp.lt.s32.totalorder %s703_s15, 3 }
   0x4   : > { %p166_p2 = pnand %p571_p0, %p165_p1 }
   0x5   : > { %p196_p3 = scmp.lt.s32.totalorder (!%p166_p2), %s567_s16, 1  ;;  %v705_v0 = vmov (!%p166_p2), 0.0|0.0   ;;  %s706_s21 = smov (!%p166_p2), 19   ;;  %v712_v6 = vmov (!%p166_p2), 0.0   ;;  %vm714_vm0 = vmmov (!%p166_p2), 0   ;;  %v222_v7 = vlaneseq (!%p166_p2) }
   0x6   : > { %169 = sbr.rel (%p166_p2) target bundleno = 391 (0x187), region = 32  ;;  %630 = vmatprep.subr.bf16.mxu1 (!%p166_p2), %v705_v0  ;;  %s707_s22 = smov (!%p166_p2), 18   ;;  %366 = vmatprep.mubr.f32.mxu0 (!%p166_p2), %v712_v6  ;;  %vm298_vm9 = vcmask (!%p166_p2), 588800  }
   0x7   : > { %s708_s23 = smov (!%p166_p2), 1   ;;  %s709_s24 = smov (!%p166_p2), 17   ;;  %611 = vmatprep.mubr.msk.f32.mxu1 (!%p166_p2), %vm714_vm0, %v712_v6  ;;  %v781_v9 = vand.u32 (!%p166_p2), 127, %v222_v7 }
   0x8   : > { %s710_s25 = smov (!%p166_p2), 127   ;;  %s711_s26 = smov (!%p166_p2), 110  }
   0x9   : > { %s713_s27 = smov (!%p166_p2), 111   ;;  %s715_s28 = smov (!%p166_p2), 109   ;;  %vm224_vm1 = vcmp.lt.s32.totalorder (!%p166_p2), %v781_v9, 19  ;;  %vm234_vm2 = vcmp.lt.s32.totalorder (!%p166_p2), %v781_v9, 18  ;;  %vm254_vm3 = vcmp.lt.s32.totalorder (!%p166_p2), %v781_v9, 1  ;;  %vm244_vm4 = vcmp.lt.s32.totalorder (!%p166_p2), %v781_v9, 17 }
   0xa   : > { %vm264_vm5 = vcmp.lt.s32.totalorder (!%p166_p2), %v781_v9, 127  ;;  %vm284_vm6 = vcmp.lt.s32.totalorder (!%p166_p2), %v781_v9, 110  ;;  %vm274_vm7 = vcmp.lt.s32.totalorder (!%p166_p2), %v781_v9, 111  ;;  %vm294_vm8 = vcmp.lt.s32.totalorder (!%p166_p2), %v781_v9, 109 }
   0xb   : > { %v445_v9 = vshrl.u32 (!%p166_p2), %v222_v7, 7 }
   0xd   : > { %s859_s16 = smov (!%p196_p3, %s567_s16), 1 }
   0xe   : > { %s642_s17 = smul.u32 24, %s859_s16  ;;  %s582_s10 = sshll.u32 %s859_s16, 4 }
   0xf   : > { %s210_s13 = scalar_lea.vmem %s857_s4, %s582_s10 }
  0x10   : > { %s200_s20 = scalar_lea.vmem %s853_s0, %s642_s17  ;;  %s205_s9 = scalar_lea.vmem %s856_s3, %s642_s17 }
  0x11   : > { %v758_v1 = vld [vmem:[%s200_s20 + $0x10] sm:$0xff]  ;;  %v760_v2 = vld [vmem:[%s200_s20] sm:$0xff]  ;;  %v762_v3 = vld [vmem:[%s200_s20 + $0x8] sm:$0xff] }
  0x12   : > { %220 = vrot.lane.b32.xlu1 %v758_v1, %s706_s21  ;;  %v662_v4 = vpack.i.bf16 %v762_v3, %v760_v2  ;;  %v682_v5 = vpack.i.bf16 %v758_v1, %v762_v3 }
  0x14   : > { %663 = vrot.lane.b32.xlu0 %v662_v4, %s706_s21 }
  0x16   : > { %232 = vrot.lane.b32.xlu1 %v758_v1, %s707_s22 }
  0x18   : > { %668 = vrot.lane.b32.xlu0 %v662_v4, %s707_s22 }
  0x1a   : > { %678 = vrot.lane.b32.xlu1 %v662_v4, %s708_s23 }
  0x1c   : > { %673 = vrot.lane.b32.xlu0 %v662_v4, %s709_s24 }
  0x1e   : > { %252 = vrot.lane.b32.xlu1 %v758_v1, %s708_s23 }
  0x20   : > { %242 = vrot.lane.b32.xlu0 %v758_v1, %s709_s24 }
  0x22   : > { %258 = vrot.lane.b32.xlu1 %v760_v2, %s710_s25 }
  0x24   : > { %683 = vrot.lane.b32.xlu0 %v682_v5, %s710_s25 }
  0x26   : > { %693 = vrot.lane.b32.xlu1 %v682_v5, %s711_s26 }
  0x28   : > { %688 = vrot.lane.b32.xlu0 %v682_v5, %s713_s27 }
  0x2a   : > { %278 = vrot.lane.b32.xlu1 %v760_v2, %s711_s26 }
  0x2c   : > { %268 = vrot.lane.b32.xlu0 %v760_v2, %s713_s27 }
  0x2e   : > { %292 = vrot.lane.b32.xlu1 %v758_v1, %s715_s28 }
  0x30   : > { %290 = vrot.lane.b32.xlu0 %v762_v3, %s715_s28 }
  0x34   : > { %288 = vrot.lane.b32.xlu0 %v760_v2, %s715_s28 }
  0x84   : > { %v221_v8 = vpop.permute.xlu1 %220 }
  0x86   : > { %v664_v10 = vpop.permute.xlu0 %663 }
  0x87   : > { %v666_v11 = vunpack.i.h.bf16 %v664_v10  ;;  %v665_v12 = vunpack.i.l.bf16 %v664_v10 }
  0x88   : > { %v233_v13 = vpop.permute.xlu1 %232 }
  0x89   : > { %v226_v18 = vsel %vm224_vm1, %v665_v12, %v666_v11  ;;  %v225_v19 = vsel %vm224_vm1, %v666_v11, %v221_v8  ;;  %v227_v27 = vsel %vm224_vm1, %v221_v8, %v665_v12 }
  0x8a   : > { %v669_v14 = vpop.permute.xlu0 %668 }
  0x8b   : > { %v671_v15 = vunpack.i.h.bf16 %v669_v14  ;;  %v670_v16 = vunpack.i.l.bf16 %v669_v14 }
  0x8c   : > { %v679_v17 = vpop.permute.xlu1 %678 }
  0x8d   : > { %v681_v20 = vunpack.i.h.bf16 %v679_v17  ;;  %v680_v21 = vunpack.i.l.bf16 %v679_v17  ;;  %v236_v22 = vsel %vm234_vm2, %v670_v16, %v671_v15  ;;  %v235_v23 = vsel %vm234_vm2, %v671_v15, %v233_v13 }
  0x8e   : > { %v674_v24 = vpop.permute.xlu0 %673  ;;  %v614_v25 = vpack.c.bf16 %v236_v22, %v226_v18  ;;  %v631_v26 = vpack.c.bf16 %v235_v23, %v225_v19  ;;  %v237_v28 = vsel %vm234_vm2, %v233_v13, %v670_v16  ;;  %v215_v13 = vld [vmem:[%s854_s1] sm:$0xff]  ;;  %v446_v16 = vsub.s32 0, %v445_v9 }
  0x8f   : > { %v676_v29 = vunpack.i.h.bf16 %v674_v24  ;;  %v675_v30 = vunpack.i.l.bf16 %v674_v24  ;;  %v616_v31 = vpack.c.bf16 %v237_v28, %v227_v27  ;;  %v256_v32 = vsel %vm254_vm3, %v680_v21, %v681_v20 }
  0x90   : > { %615 = vmatprep.subr.bf16.mxu0 %v614_v25  ;;  %632 = vmatpush3.bf16.msra.mxu1 %v631_v26  ;;  %v253_v33 = vpop.permute.xlu1 %252  ;;  %v454_v17 = vsub.s32 2, %v445_v9  ;;  %v450_v18 = vsub.s32 1, %v445_v9 }
  0x91   : > { %617 = vmatpush1.bf16.msra.mxu0 %v616_v31  ;;  %v255_v34 = vsel %vm254_vm3, %v681_v20, %v253_v33  ;;  %v257_v35 = vsel %vm254_vm3, %v253_v33, %v680_v21  ;;  %v246_v36 = vsel %vm244_vm4, %v675_v30, %v676_v29  ;;  %633 = vmatprep.subr.bf16.mxu1 %v705_v0 }
  0x92   : > { %v243_v37 = vpop.permute.xlu0 %242  ;;  %v618_v38 = vpack.c.bf16 %v256_v32, %v246_v36 }
  0x93   : > { %v245_v39 = vsel %vm244_vm4, %v676_v29, %v243_v37  ;;  %v247_v40 = vsel %vm244_vm4, %v243_v37, %v675_v30 }
  0x94   : > { %v620_v41 = vpack.c.bf16 %v257_v35, %v247_v40  ;;  %v634_v42 = vpack.c.bf16 %v255_v34, %v245_v39  ;;  %619 = vmatprep.subr.bf16.mxu0 %v618_v38  ;;  %v259_v43 = vpop.permute.xlu1 %258 }
  0x96   : > { %v684_v44 = vpop.permute.xlu0 %683  ;;  %621 = vmatpush1.bf16.msra.mxu0 %v620_v41  ;;  %635 = vmatpush3.bf16.msra.mxu1 %v634_v42 }
  0x97   : > { %v686_v45 = vunpack.i.h.bf16 %v684_v44  ;;  %v685_v46 = vunpack.i.l.bf16 %v684_v44  ;;  %636 = vmatprep.subr.bf16.mxu1 %v705_v0 }
  0x98   : > { %v694_v47 = vpop.permute.xlu1 %693 }
  0x99   : > { %v696_v48 = vunpack.i.h.bf16 %v694_v47  ;;  %v695_v49 = vunpack.i.l.bf16 %v694_v47  ;;  %v265_v50 = vsel %vm264_vm5, %v685_v46, %v686_v45  ;;  %v267_v51 = vsel %vm264_vm5, %v686_v45, %v259_v43 }
  0x9a   : > { %v689_v52 = vpop.permute.xlu0 %688  ;;  %v622_v53 = vpack.c.bf16 %v265_v50, %v762_v3  ;;  %v637_v54 = vpack.c.bf16 %v267_v51, %v758_v1  ;;  %v266_v55 = vsel %vm264_vm5, %v259_v43, %v685_v46 }
  0x9b   : > { %v691_v56 = vunpack.i.h.bf16 %v689_v52  ;;  %v690_v57 = vunpack.i.l.bf16 %v689_v52  ;;  %v624_v58 = vpack.c.bf16 %v266_v55, %v760_v2  ;;  %v285_v59 = vsel %vm284_vm6, %v695_v49, %v696_v48 }
  0x9c   : > { %623 = vmatprep.subr.bf16.mxu0 %v622_v53  ;;  %638 = vmatpush3.bf16.msra.mxu1 %v637_v54  ;;  %v279_v60 = vpop.permute.xlu1 %278 }
  0x9d   : > { %625 = vmatpush1.bf16.msra.mxu0 %v624_v58  ;;  %v286_v61 = vsel %vm284_vm6, %v279_v60, %v695_v49  ;;  %v287_v62 = vsel %vm284_vm6, %v696_v48, %v279_v60  ;;  %v275_v63 = vsel %vm274_vm7, %v690_v57, %v691_v56  ;;  %639 = vmatprep.subr.bf16.mxu1 %v705_v0 }
  0x9e   : > { %v269_v1 = vpop.permute.xlu0 %268  ;;  %v626_v2 = vpack.c.bf16 %v285_v59, %v275_v63 }
  0x9f   : > { %v276_v3 = vsel %vm274_vm7, %v269_v1, %v690_v57  ;;  %v277_v4 = vsel %vm274_vm7, %v691_v56, %v269_v1 }
  0xa0   : > { %v628_v5 = vpack.c.bf16 %v286_v61, %v276_v3  ;;  %v640_v8 = vpack.c.bf16 %v287_v62, %v277_v4  ;;  %627 = vmatprep.subr.bf16.mxu0 %v626_v2  ;;  %v293_v10 = vpop.permute.xlu1 %292 }
  0xa2   : > { %v291_v11 = vpop.permute.xlu0 %290  ;;  %629 = vmatpush1.bf16.msra.mxu0 %v628_v5  ;;  %641 = vmatpush3.bf16.msra.mxu1 %v640_v8 }
  0xa3   : > { %v295_v12 = vsel %vm294_vm8, %v291_v11, %v293_v10  ;;  %609 = vmatprep.subr.mxu1 %v712_v6  ;;  %v211_v6 = vld [vmem:[%s855_s2] sm:$0x7] }
  0xa4   : > { %318 = vmatprep.subr.mxu0 %v295_v12  ;;  %v447_v19 = vrot.slane %v211_v6, %v446_v16  ;;  %v455_v20 = vrot.slane %v211_v6, %v454_v17  ;;  %v451_v21 = vrot.slane %v211_v6, %v450_v18 }
  0xa6   : > { %v289_v0 = vpop.permute.xlu0 %288 }
  0xa7   : > { %v296_v14 = vsel %vm294_vm8, %v289_v0, %v291_v11  ;;  %v297_v15 = vsel %vm294_vm8, %v293_v10, %v289_v0 }
  0xa8   : > { %319 = vmatpush1.msra.mxu0 %v296_v14  ;;  %610 = vmatpush3.msra.mxu1 %v297_v15 }
  0xa9   : > { %576 = vmatmul.mubr.msk.f32.vlgmr.msra.gmra.mrb[0].mxu0 %vm298_vm9, %v215_v13  ;;  %612 = vmatmul.mubr.msk.f32.vlgmr.msra.gmra.mrb[0].mxu1 %vm298_vm9, %v215_v13 }
 0x17c   : > { %v368_v22 = vpop.f32.mrb[0].mxu0  ;;  %v439_v23 = vpop.f32.mrb[0].mxu1 }
 0x17d   : > { %v459_v24 = vmul.f32 %v447_v19, %v368_v22  ;;  %v370_v25 = vpop.f32.mrb[1].mxu0  ;;  %v461_v7 = vmul.f32 %v455_v20, %v439_v23  ;;  %v613_v26 = vpop.f32.mrb[1].mxu1 }
 0x17e   : > { %v460_v27 = vmul.f32 %v451_v21, %v370_v25 }
 0x17f   : > { %462 = vst [vmem:[%s205_s9] sm:$0xff] %v459_v24  ;;  %v466_v28 = vmul.f32 %v459_v24, %v459_v24  ;;  %464 = vst [vmem:[%s205_s9 + $0x10] sm:$0xff] %v461_v7  ;;  %v475_v31 = vmul.f32 %v461_v7, %v461_v7 }
 0x180   : > { %463 = vst [vmem:[%s205_s9 + $0x8] sm:$0xff] %v460_v27  ;;  %v469_v29 = vadd.f32 %v460_v27, %v459_v24  ;;  %v470_v30 = vmul.f32 %v460_v27, %v460_v27 }
 0x182   : > { %v471_v32 = vadd.f32 %v470_v30, %v466_v28  ;;  %v474_v33 = vadd.f32 %v469_v29, %v461_v7 }
 0x184   : > { %v476_v34 = vadd.f32 %v475_v31, %v471_v32  ;;  %477 = vst [vmem:[%s210_s13] sm:$0xff] %v474_v33 }
 0x186   : > { %478 = vst [vmem:[%s210_s13 + $0x8] sm:$0xff] %v476_v34 }
 0x187 PF: > { %s15_s15 = sadd.s32 1, %s703_s15  }
 0x188   : > { %p12_p4 = scmp.ge.s32.totalorder %s15_s15, 4  }
 0x18a   :  { %14 = sbr.rel (!%p12_p4) target bundleno = 1 (0x1), region = 76 }

</bundles_post_ra>
